<compile_context>
chip_gen: v5e
topology: v5e:2x2
jax: 0.10.0
libtpu: 0.0.40
codegen_flags: <defaults>
</compile_context>

<pallas_src>
import functools

import jax
import jax.numpy as jnp
from jax.experimental import pallas as pl
from jax.experimental.pallas import tpu as pltpu


def _se_kernel(x_ref, w1_ref, b1_ref, w2_ref, b2_ref, w3_ref, b3_ref, o_ref,
               *, inv_hw):
    # x_ref:  (1, C, H*W)  lane-dense view of one batch element (NCHW-flattened)
    # w1:(C,Cr) b1:(1,Cr)  w2:(Cr,Cr) b2:(1,Cr)  w3:(Cr,C) b3:(1,C)
    x = x_ref[...].astype(jnp.float32)                      # (1, C, S)

    # --- squeeze: global average pool over the spatial (lane) axis ---
    y = jnp.sum(x, axis=-1) * inv_hw                        # (1, C)

    # --- excitation: Linear -> ReLU -> Linear -> ReLU -> Linear -> Sigmoid ---
    h1 = jnp.dot(y, w1_ref[...].astype(jnp.float32),
                 preferred_element_type=jnp.float32) + b1_ref[...]
    h1 = jnp.maximum(h1, 0.0)                               # (1, Cr)

    h2 = jnp.dot(h1, w2_ref[...].astype(jnp.float32),
                 preferred_element_type=jnp.float32) + b2_ref[...]
    h2 = jnp.maximum(h2, 0.0)                               # (1, Cr)

    s = jax.nn.sigmoid(
        jnp.dot(h2, w3_ref[...].astype(jnp.float32),
                preferred_element_type=jnp.float32) + b3_ref[...])  # (1, C)

    # --- scale: broadcast per-channel gate across the spatial lanes ---
    o_ref[...] = (x * s[:, :, None]).astype(o_ref.dtype)


def se_layer_forward(x_nchw, w1, b1, w2, b2, w3, b3):
    """x: (B, C, H, W) NCHW.  w*: (in, out) layout.  b*: (1, out)."""
    B, C, H, W = x_nchw.shape
    Cr = w1.shape[1]
    S = H * W

    # Trailing-dim merge only -- no transpose, no HBM relayout.
    x3 = x_nchw.reshape(B, C, S)

    kernel = functools.partial(_se_kernel, inv_hw=1.0 / float(S))

    out3 = pl.pallas_call(
        kernel,
        out_shape=jax.ShapeDtypeStruct((B, C, S), x_nchw.dtype),
        grid_spec=pltpu.PrefetchScalarGridSpec(
            num_scalar_prefetch=0,
            grid=(B,),
            in_specs=[
                pl.BlockSpec((1, C, S), lambda b: (b, 0, 0)),   # x (lane-dense)
                pl.BlockSpec((C, Cr), lambda b: (0, 0)),        # w1
                pl.BlockSpec((1, Cr), lambda b: (0, 0)),        # b1
                pl.BlockSpec((Cr, Cr), lambda b: (0, 0)),       # w2
                pl.BlockSpec((1, Cr), lambda b: (0, 0)),        # b2
                pl.BlockSpec((Cr, C), lambda b: (0, 0)),        # w3
                pl.BlockSpec((1, C), lambda b: (0, 0)),         # b3
            ],
            out_specs=pl.BlockSpec((1, C, S), lambda b: (b, 0, 0)),
        ),
        compiler_params=pltpu.CompilerParams(
            dimension_semantics=("parallel",)),
    )(x3, w1, b1, w2, b2, w3, b3)

    return out3.reshape(B, C, H, W)


def _reference_forward(x, w1, b1, w2, b2, w3, b3):
    """Pure-JAX reference matching the PyTorch SELayer forward."""
    y = jnp.mean(x, axis=(2, 3))                            # (B, C)
    h1 = jnp.maximum(y @ w1 + b1[0], 0.0)
    h2 = jnp.maximum(h1 @ w2 + b2[0], 0.0)
    s = jax.nn.sigmoid(h2 @ w3 + b3[0])                     # (B, C)
    return x * s[:, :, None, None]


if __name__ == "__main__":
    key = jax.random.PRNGKey(0)
    B, C, H, W = 2, 64, 16, 16
    reduction = 16
    Cr = C // reduction                                     # = 4

    kx, k1, k2, k3, k4, k5, k6 = jax.random.split(key, 7)
    x = jax.random.normal(kx, (B, C, H, W), jnp.float32)

    # Linear params, stored as (in, out) so the kernel does y @ W directly
    # (semantically identical to PyTorch's y @ weight.T with weight=(out,in)).
    w1 = 0.2 * jax.random.normal(k1, (C, Cr), jnp.float32)
    b1 = 0.1 * jax.random.normal(k2, (1, Cr), jnp.float32)
    w2 = 0.2 * jax.random.normal(k3, (Cr, Cr), jnp.float32)
    b2 = 0.1 * jax.random.normal(k4, (1, Cr), jnp.float32)
    w3 = 0.2 * jax.random.normal(k5, (Cr, C), jnp.float32)
    b3 = 0.1 * jax.random.normal(k6, (1, C), jnp.float32)

    out = se_layer_forward(x, w1, b1, w2, b2, w3, b3)
    out = jax.block_until_ready(out)

    ref = _reference_forward(x, w1, b1, w2, b2, w3, b3)
    assert out.shape == (B, C, H, W)
    assert jnp.allclose(out, ref, atol=1e-5, rtol=1e-5)

    print("KERNEL_OK")
</pallas_src>

<mosaic_0001>
module attributes {stable_mosaic.version = 11 : i64} {
  func.func @_se_kernel(%arg0: i32, %arg1: memref<1x64x256xf32, #tpu.memory_space<vmem>>, %arg2: memref<64x4xf32, #tpu.memory_space<vmem>>, %arg3: memref<1x4xf32, #tpu.memory_space<vmem>>, %arg4: memref<4x4xf32, #tpu.memory_space<vmem>>, %arg5: memref<1x4xf32, #tpu.memory_space<vmem>>, %arg6: memref<4x64xf32, #tpu.memory_space<vmem>>, %arg7: memref<1x64xf32, #tpu.memory_space<vmem>>, %arg8: memref<1x64x256xf32, #tpu.memory_space<vmem>>) attributes {dimension_semantics = [#tpu.dimension_semantics<parallel>], iteration_bounds = array<i64: 2>, scalar_prefetch = 0 : i64, scratch_operands = 0 : i64, tpu.core_type = #tpu.core_type<tc>, window_params = [{transform_indices = @transform_0, window_bounds = array<i64: 1, 64, 256>}, {pipeline_mode = #tpu.pipeline_mode<synchronous>, transform_indices = @transform_1, window_bounds = array<i64: 64, 4>}, {pipeline_mode = #tpu.pipeline_mode<synchronous>, transform_indices = @transform_2, window_bounds = array<i64: 1, 4>}, {pipeline_mode = #tpu.pipeline_mode<synchronous>, transform_indices = @transform_3, window_bounds = array<i64: 4, 4>}, {pipeline_mode = #tpu.pipeline_mode<synchronous>, transform_indices = @transform_4, window_bounds = array<i64: 1, 4>}, {pipeline_mode = #tpu.pipeline_mode<synchronous>, transform_indices = @transform_5, window_bounds = array<i64: 4, 64>}, {pipeline_mode = #tpu.pipeline_mode<synchronous>, transform_indices = @transform_6, window_bounds = array<i64: 1, 64>}, {transform_indices = @transform_7, window_bounds = array<i64: 1, 64, 256>}]} {
    %c0 = arith.constant 0 : index
    %c0_0 = arith.constant 0 : index
    %c0_1 = arith.constant 0 : index
    %0 = vector.load %arg1[%c0, %c0_0, %c0_1] : memref<1x64x256xf32, #tpu.memory_space<vmem>>, vector<1x64x256xf32>
    %cst = arith.constant dense<0.000000e+00> : vector<1x64xf32>
    %1 = vector.multi_reduction <add>, %0, %cst [2] : vector<1x64x256xf32> to vector<1x64xf32>
    %cst_2 = arith.constant 3.906250e-03 : f32
    %2 = vector.broadcast %cst_2 : f32 to vector<1x64xf32>
    %3 = arith.mulf %1, %2 : vector<1x64xf32>
    %c0_3 = arith.constant 0 : index
    %c0_4 = arith.constant 0 : index
    %4 = vector.load %arg2[%c0_3, %c0_4] : memref<64x4xf32, #tpu.memory_space<vmem>>, vector<64x4xf32>
    %cst_5 = arith.constant dense<0.000000e+00> : vector<1x4xf32>
    %5 = tpu.matmul %3, %4, %cst_5 {dimension_numbers = #tpu.dot_dimension_numbers<[1], [0], [0], [1], [0, 0, 1, 1], [], []>} : vector<1x64xf32>, vector<64x4xf32>, vector<1x4xf32> -> vector<1x4xf32>
    %c0_6 = arith.constant 0 : index
    %c0_7 = arith.constant 0 : index
    %6 = vector.load %arg3[%c0_6, %c0_7] : memref<1x4xf32, #tpu.memory_space<vmem>>, vector<1x4xf32>
    %7 = arith.addf %5, %6 : vector<1x4xf32>
    %cst_8 = arith.constant 0.000000e+00 : f32
    %8 = vector.broadcast %cst_8 : f32 to vector<1x4xf32>
    %9 = arith.maximumf %7, %8 : vector<1x4xf32>
    %c0_9 = arith.constant 0 : index
    %c0_10 = arith.constant 0 : index
    %10 = vector.load %arg4[%c0_9, %c0_10] : memref<4x4xf32, #tpu.memory_space<vmem>>, vector<4x4xf32>
    %cst_11 = arith.constant dense<0.000000e+00> : vector<1x4xf32>
    %11 = tpu.matmul %9, %10, %cst_11 {dimension_numbers = #tpu.dot_dimension_numbers<[1], [0], [0], [1], [0, 0, 1, 1], [], []>} : vector<1x4xf32>, vector<4x4xf32>, vector<1x4xf32> -> vector<1x4xf32>
    %c0_12 = arith.constant 0 : index
    %c0_13 = arith.constant 0 : index
    %12 = vector.load %arg5[%c0_12, %c0_13] : memref<1x4xf32, #tpu.memory_space<vmem>>, vector<1x4xf32>
    %13 = arith.addf %11, %12 : vector<1x4xf32>
    %cst_14 = arith.constant 0.000000e+00 : f32
    %14 = vector.broadcast %cst_14 : f32 to vector<1x4xf32>
    %15 = arith.maximumf %13, %14 : vector<1x4xf32>
    %c0_15 = arith.constant 0 : index
    %c0_16 = arith.constant 0 : index
    %16 = vector.load %arg6[%c0_15, %c0_16] : memref<4x64xf32, #tpu.memory_space<vmem>>, vector<4x64xf32>
    %cst_17 = arith.constant dense<0.000000e+00> : vector<1x64xf32>
    %17 = tpu.matmul %15, %16, %cst_17 {dimension_numbers = #tpu.dot_dimension_numbers<[1], [0], [0], [1], [0, 0, 1, 1], [], []>} : vector<1x4xf32>, vector<4x64xf32>, vector<1x64xf32> -> vector<1x64xf32>
    %c0_18 = arith.constant 0 : index
    %c0_19 = arith.constant 0 : index
    %18 = vector.load %arg7[%c0_18, %c0_19] : memref<1x64xf32, #tpu.memory_space<vmem>>, vector<1x64xf32>
    %19 = arith.addf %17, %18 : vector<1x64xf32>
    %20 = arith.negf %19 : vector<1x64xf32>
    %21 = math.exp %20 : vector<1x64xf32>
    %cst_20 = arith.constant 1.000000e+00 : f32
    %22 = vector.broadcast %cst_20 : f32 to vector<1x64xf32>
    %23 = arith.addf %22, %21 : vector<1x64xf32>
    %24 = arith.divf %22, %23 : vector<1x64xf32>
    %25 = vector.shape_cast %24 : vector<1x64xf32> to vector<1x64x1xf32>
    %26 = vector.broadcast %25 : vector<1x64x1xf32> to vector<1x64x256xf32>
    %27 = arith.mulf %0, %26 : vector<1x64x256xf32>
    %c0_21 = arith.constant 0 : index
    %c0_22 = arith.constant 0 : index
    %c0_23 = arith.constant 0 : index
    %28 = vector.load %arg8[%c0_21, %c0_22, %c0_23] : memref<1x64x256xf32, #tpu.memory_space<vmem>>, vector<1x64x256xf32>
    tpu.vector_store %arg8[%c0_21, %c0_22, %c0_23], %27 {strides = array<i32>} : memref<1x64x256xf32, #tpu.memory_space<vmem>>, vector<1x64x256xf32>,
    return
  }
  func.func @transform_0(%arg0: i32) -> (i32, i32, i32) {
    %c0_i32 = arith.constant 0 : i32
    %c0_i32_0 = arith.constant 0 : i32
    %c0_i32_1 = arith.constant 0 : i32
    return %arg0, %c0_i32, %c0_i32_0 : i32, i32, i32
  }
  func.func @transform_1(%arg0: i32) -> (i32, i32) {
    %c0_i32 = arith.constant 0 : i32
    %c0_i32_0 = arith.constant 0 : i32
    %c0_i32_1 = arith.constant 0 : i32
    return %c0_i32, %c0_i32_0 : i32, i32
  }
  func.func @transform_2(%arg0: i32) -> (i32, i32) {
    %c0_i32 = arith.constant 0 : i32
    %c0_i32_0 = arith.constant 0 : i32
    %c0_i32_1 = arith.constant 0 : i32
    return %c0_i32, %c0_i32_0 : i32, i32
  }
  func.func @transform_3(%arg0: i32) -> (i32, i32) {
    %c0_i32 = arith.constant 0 : i32
    %c0_i32_0 = arith.constant 0 : i32
    %c0_i32_1 = arith.constant 0 : i32
    return %c0_i32, %c0_i32_0 : i32, i32
  }
  func.func @transform_4(%arg0: i32) -> (i32, i32) {
    %c0_i32 = arith.constant 0 : i32
    %c0_i32_0 = arith.constant 0 : i32
    %c0_i32_1 = arith.constant 0 : i32
    return %c0_i32, %c0_i32_0 : i32, i32
  }
  func.func @transform_5(%arg0: i32) -> (i32, i32) {
    %c0_i32 = arith.constant 0 : i32
    %c0_i32_0 = arith.constant 0 : i32
    %c0_i32_1 = arith.constant 0 : i32
    return %c0_i32, %c0_i32_0 : i32, i32
  }
  func.func @transform_6(%arg0: i32) -> (i32, i32) {
    %c0_i32 = arith.constant 0 : i32
    %c0_i32_0 = arith.constant 0 : i32
    %c0_i32_1 = arith.constant 0 : i32
    return %c0_i32, %c0_i32_0 : i32, i32
  }
  func.func @transform_7(%arg0: i32) -> (i32, i32, i32) {
    %c0_i32 = arith.constant 0 : i32
    %c0_i32_0 = arith.constant 0 : i32
    %c0_i32_1 = arith.constant 0 : i32
    return %arg0, %c0_i32, %c0_i32_0 : i32, i32, i32
  }
}

</mosaic_0001>

<bundles_post_ra>
// kernel: tpu_custom_call.1
= control target key start
LH: loop header
LB: loop body
LE: loop exit
PB: predicated region body
PF: predicated region fallthrough
CT: control target
= control target key end

     0   :  { %12 = vsyncpa [#allocation3], 0  ;;  %s1149_s0 = inlined_call_operand.hbm [shape: f32[2,64,256], index: 0, kind: input, shape index: {}]   ;;  %s1150_s1 = inlined_call_operand.vmem [shape: f32[64,4], index: 1, kind: input, shape index: {}]   ;;  %s1151_s2 = inlined_call_operand.vmem [shape: f32[1,4], index: 2, kind: input, shape index: {}]   ;;  %s1152_s3 = inlined_call_operand.vmem [shape: f32[4,4], index: 3, kind: input, shape index: {}]   ;;  %s1153_s4 = inlined_call_operand.vmem [shape: f32[1,4], index: 4, kind: input, shape index: {}]   ;;  %s1154_s5 = inlined_call_operand.vmem [shape: f32[4,64], index: 5, kind: input, shape index: {}]   ;;  %s1155_s6 = inlined_call_operand.vmem [shape: f32[1,64], index: 6, kind: input, shape index: {}]   ;;  %s1156_s7 = inlined_call_operand.hbm [shape: f32[2,64,256], index: 7, kind: output, shape index: {}]  }
   0x1   :  { %14 = vsyncpa [#allocation3 + $0x1], 0 }
   0x2   :  { %15 = vsyncpa [#allocation4], 0 }
   0x3   :  { %17 = vsyncpa [#allocation4 + $0x1], 0  ;;  %s894_s24 = smov 0   ;;  %s896_s25 = smov 0  }
   0x4   :  { %s898_s26 = smov 0   ;;  %s900_s27 = smov 0  }
   0x5 LB: > { %s915_s28 = sadd.s32 4294967295, %s848_s27   ;;  %s667_s29 = sadd.s32 4294967294, %s848_s27   ;;  %s848_s27 = sphi %s900_s27, %s1168_s27   ;;  %s844_s26 = sphi %s898_s26, %s1167_s26   ;;  %s840_s25 = sphi %s896_s25, %s1166_s25   ;;  %s836_s24 = sphi %s894_s24, %s1165_s24  }
   0x6   : > { %s919_s30 = sadd.s32 1, %s848_s27   ;;  %s30_s8 = sadd.s32 1, %s844_s26 }
   0x7   : > { %s27_s9 = ssub.s32 %s848_s27, %s919_s30  ;;  %p37_p0 = scmp.ne.s32.totalorder %s844_s26, %s840_s25 }
   0x8   : > { %p28_p1 = scmp.eq.s32.totalorder %s27_s9, 0  ;;  %p38_p2 = scmp.eq.s32.totalorder %s848_s27, 0 }
   0x9   : > { %p43_p3 = scmp.ne.s32.totalorder %s840_s25, %s836_s24  ;;  %p44_p4 = scmp.eq.s32.totalorder %s915_s28, 0 }
   0xa   : > { %s931_s10 = scalar_select %p28_p1, %s844_s26, %s30_s8  }
   0xb   : > { %p933_p5 = por %p38_p2, %p37_p0  ;;  %p937_p6 = por %p44_p4, %p43_p3 }
   0xc   : > { %1157 = sst [smem:[#allocation8_spill]] %s931_s10  ;;  %p193_p7 = scmp.eq.s32.totalorder %s915_s28, 1 }
   0xd   : > { %p199_p8 = scmp.eq.s32.totalorder %s667_s29, 1  ;;  %p701_p10 = scmp.lt.s32.totalorder %s848_s27, 2 }
   0xe   : > { %p944_p11 = por %p193_p7, %p37_p0  ;;  %s237_s15 = sand.u32 1, %s844_s26  }
   0xf   : > { %p948_p12 = por %p199_p8, %p43_p3  ;;  %s687_s16 = sshll.u32 %s848_s27, 7 }
  0x10   : > { %s670_s17 = sshll.u32 %s237_s15, 7  ;;  %s246_s20 = scalar_lea.hbm %s1149_s0, %s687_s16 }
  0x11   : > { %s247_s21 = sshll.u32 %s246_s20, 4  ;;  %s241_s22 = scalar_lea.vmem [#allocation2], %s670_s17  ;;  %s248_s21 = int_to_ptr.hbm [resolvable:$true] %s247_s21 }
  0x12   : > { %s249_s23 = sshll.u32 %s241_s22, 4  ;;  %p959_p13 = pnand %p701_p10, %p933_p5  ;;  %s250_s23 = int_to_ptr.vmem [resolvable:$true] %s249_s23 }
  0x13   : > { %p673_p0 = scmp.ge.s32.totalorder %s848_s27, 1  ;;  %p257_p1 = scmp.lt.s32.totalorder %s848_s27, 3 }
  0x14   : > { %s238_s8 = scalar_lea.sflag [#allocation3], %s237_s15  ;;  %s752_s9 = sshra.s32 %s248_s21, 4  ;;  %s753_s9 = int_to_ptr.hbm [resolvable:$true] %s752_s9 }
  0x15   : > { %s754_s10 = scalar_lea.hbm %s753_s9, 128  ;;  %p756_p3 = pneg %p959_p13 }
  0x16   : > { %p755_p2 = scmp.ne.s32.totalorder %s753_s9, %s754_s10  ;;  %s759_s11 = scalar_lea.hbm %s1149_s0, 256 }
  0x17   : > { %p760_p5 = scmp.lt.s32.totalorder %s753_s9, %s1149_s0  ;;  %p761_p8 = scmp.lt.s32.totalorder %s759_s11, %s754_s10 }
  0x18   : > { %p757_p4 = pnand %p756_p3, %p755_p2 }
  0x19   : > { %p762_p10 = por %p761_p8, %p760_p5 }
  0x1a   : > { %p758_p7 = pneg %p757_p4 }
  0x1c   : > { %p763_p9 = pnand %p762_p10, %p758_p7 }
  0x1e   : > { %766 = shalt.err (!%p763_p9)
}
  0x1f   : > { %s850_s15 = smov 256   ;;  %s851_s20 = smov 16  }
  0x20   : > { %696 = dma.hbm_to_vmem [thread:$0]  (!%p959_p13), %s248_s21, 2048, %s250_s23, %s238_s8, %s850_s15, %s850_s15, %s851_s20  }
  0x21   : > { %p258_p2 = pnand %p673_p0, %p257_p1 }
  0x22   : > { %s980_s22 = sand.u32 (!%p258_p2), 1, %s840_s25  }
  0x23   : > { %261 = sbr.rel (%p258_p2) target bundleno = 760 (0x2f8), region = 48  ;;  %s674_s10 = sshll.u32 (!%p258_p2), %s980_s22, 7 }
  0x24   : > { %s264_s9 = scalar_lea.sflag (!%p258_p2), [#allocation3], %s980_s22  ;;  %s267_s16 = scalar_lea.vmem (!%p258_p2), [#allocation2], %s674_s10 }
  0x28   : > { %827 = dma.done.wait (%p937_p6), %s264_s9, 2048  }
  0x29   : > { %829 = vsyncadd (%p937_p6), %s264_s9, 4294965248  ;;  %v990_v0 = vld [vmem:[%s267_s16] sm:$0xff]  ;;  %v992_v1 = vld [vmem:[%s267_s16 + $0x8] sm:$0xff]  ;;  %v364_v32 = vlaneseq  ;;  %vm369_vm0 = vcmask 130112   ;;  %vm373_vm1 = vcmask 195712   ;;  %vm377_vm2 = vcmask 261312  }
  0x2a   : > { %v994_v2 = vld [vmem:[%s267_s16 + $0x20] sm:$0xff]  ;;  %v315_v3 = vadd.f32 %v992_v1, %v990_v0  ;;  %v998_v4 = vld [vmem:[%s267_s16 + $0x28] sm:$0xff]  ;;  %v1008_v9 = vld [vmem:[%s267_s16 + $0x10] sm:$0xff]  ;;  %vm381_vm3 = vcmask 326912   ;;  %vm385_vm4 = vcmask 392512   ;;  %vm389_vm5 = vcmask 458112  }
  0x2b   : > { %v1000_v5 = vld [vmem:[%s267_s16 + $0x40] sm:$0xff]  ;;  %v1002_v6 = vld [vmem:[%s267_s16 + $0x48] sm:$0xff]  ;;  %v321_v7 = vadd.f32 %v998_v4, %v994_v2  ;;  %v1010_v10 = vld [vmem:[%s267_s16 + $0x18] sm:$0xff]  ;;  %v365_v36 = vand.u32 127, %v364_v32  ;;  %vm393_vm6 = vcmask 523712   ;;  %vm395_vm7 = vcmask 523264  }
  0x2c   : > { %v327_v8 = vadd.f32 %v1002_v6, %v1000_v5  ;;  %316 = vadd.xlane.f32.xlu0 %v315_v3  ;;  %v1012_v11 = vld [vmem:[%s267_s16 + $0x30] sm:$0xff]  ;;  %v1014_v12 = vld [vmem:[%s267_s16 + $0x38] sm:$0xff]  ;;  %v318_v15 = vadd.f32 %v1010_v10, %v1008_v9  ;;  %v1026_v18 = vld [vmem:[%s267_s16 + $0x60] sm:$0xff]  ;;  %vm425_vm8 = vcmask 1043456   ;;  %vm421_vm9 = vcmask 31744   ;;  %s1083_s12 = scalar_lea.vmem [#allocation5], %s674_s10 }
  0x2d   : > { %322 = vadd.xlane.f32.xlu1 %v321_v7  ;;  %v1016_v13 = vld [vmem:[%s267_s16 + $0x50] sm:$0xff]  ;;  %v1018_v14 = vld [vmem:[%s267_s16 + $0x58] sm:$0xff]  ;;  %v324_v16 = vadd.f32 %v1014_v12, %v1012_v11  ;;  %v1028_v19 = vld [vmem:[%s267_s16 + $0x68] sm:$0xff]  ;;  %v367_v38 = vadd.s32 4294967288, %v365_v36  ;;  %v371_v39 = vadd.s32 4294967280, %v365_v36  ;;  %v375_v42 = vadd.s32 4294967272, %v365_v36 }
  0x2e   : > { %328 = vadd.xlane.f32.xlu2 %v327_v8  ;;  %v330_v17 = vadd.f32 %v1018_v14, %v1016_v13  ;;  %v1030_v20 = vld [vmem:[%s267_s16 + $0x70] sm:$0xff]  ;;  %v1032_v21 = vld [vmem:[%s267_s16 + $0x78] sm:$0xff]  ;;  %v333_v22 = vadd.f32 %v1028_v19, %v1026_v18  ;;  %v352_v26 = vld [vmem:[%s1150_s1 + $0x28] sm:$0xff]  ;;  %v379_v46 = vadd.s32 4294967264, %v365_v36  ;;  %v383_v53 = vadd.s32 4294967256, %v365_v36  ;;  %s688_s10 = sshll.u32 %s915_s28, 7 }
  0x2f   : > { %v336_v23 = vadd.f32 %v1032_v21, %v1030_v20  ;;  %v354_v24 = vld [vmem:[%s1150_s1 + $0x38] sm:$0xff]  ;;  %v353_v25 = vld [vmem:[%s1150_s1 + $0x30] sm:$0xff]  ;;  %v351_v27 = vld [vmem:[%s1150_s1 + $0x20] sm:$0xff]  ;;  %v387_v59 = vadd.s32 4294967248, %v365_v36  ;;  %v391_v62 = vadd.s32 4294967240, %v365_v36  ;;  %s590_s29 = scalar_lea.hbm %s1156_s7, %s688_s10  ;;  %s591_s8 = sshll.u32 %s1083_s12, 4  ;;  %s592_s8 = int_to_ptr.vmem [resolvable:$true] %s591_s8 }
  0x30   : > { %406 = vmatpush.msra.mxu0 %v354_v24  ;;  %v350_v28 = vld [vmem:[%s1150_s1 + $0x18] sm:$0xff]  ;;  %v349_v29 = vld [vmem:[%s1150_s1 + $0x10] sm:$0xff]  ;;  %v348_v30 = vld [vmem:[%s1150_s1 + $0x8] sm:$0xff]  ;;  %s593_s17 = sshll.u32 %s590_s29, 4  ;;  %s579_s28 = scalar_lea.sflag [#allocation4], %s980_s22  ;;  %s594_s17 = int_to_ptr.hbm [resolvable:$true] %s593_s17 }
  0x31   : > { %v347_v31 = vld [vmem:[%s1150_s1] sm:$0xff]  ;;  %s796_s11 = sshra.s32 %s594_s17, 4  ;;  %s802_s20 = scalar_lea.hbm %s1156_s7, 256  ;;  %s797_s11 = int_to_ptr.hbm [resolvable:$true] %s796_s11 }
  0x32   : > { %407 = vmatpush.msra.mxu0 %v353_v25  ;;  %v419_v24 = vld [vmem:[%s1152_s3] sm:$0xf]  ;;  %s798_s18 = scalar_lea.hbm %s797_s11, 128  ;;  %p803_p0 = scmp.lt.s32.totalorder %s797_s11, %s1156_s7 }
  0x33   : > { %677 = vmatpush.msk.msra.mxu1 %vm425_vm8, %v419_v24  ;;  %v355_v25 = vld [vmem:[%s1151_s2] sm:$0x1]  ;;  %p799_p6 = scmp.ne.s32.totalorder %s797_s11, %s798_s18  ;;  %p804_p1 = scmp.lt.s32.totalorder %s802_s20, %s798_s18 }
  0x34   : > { %319 = vadd.xlane.f32.xlu0 %v318_v15  ;;  %408 = vmatpush.msra.mxu0 %v352_v26 }
  0x35   : > { %325 = vadd.xlane.f32.xlu1 %v324_v16  ;;  %p800_p9 = pnand %p799_p6, %p944_p11  ;;  %p805_p3 = por %p804_p1, %p803_p0 }
  0x36   : > { %331 = vadd.xlane.f32.xlu2 %v330_v17  ;;  %409 = vmatpush.msra.mxu0 %v351_v27 }
  0x37   : > { %p801_p13 = pneg %p800_p9 }
  0x38   : > { %410 = vmatpush.msra.mxu0 %v350_v28 }
  0x39   : > { %p806_p4 = pnand %p805_p3, %p801_p13 }
  0x3a   : > { %411 = vmatpush.msra.mxu0 %v349_v29  ;;  %v450_v29 = vld [vmem:[%s1154_s5] sm:$0xf] }
  0x3b   : > { %679 = vmatpush.msk.msra.mxu2 %vm425_vm8, %v450_v29 }
  0x3c   : > { %334 = vadd.xlane.f32.xlu0 %v333_v22  ;;  %412 = vmatpush.msra.mxu0 %v348_v30  ;;  %v420_v30 = vld [vmem:[%s1153_s4] sm:$0x1] }
  0x3d   : > { %337 = vadd.xlane.f32.xlu1 %v336_v23 }
  0x3e   : > { %413 = vmatpush.msra.mxu0 %v347_v31 }
  0x9f   : > { %v317_v33 = vpop.xlane.xlu0 %316 }
  0xa0   : > { %v323_v34 = vpop.xlane.xlu1 %322  ;;  %v339_v37 = vmul.f32 0.00390625, %v317_v33 }
  0xa1   : > { %v329_v35 = vpop.xlane.xlu2 %328  ;;  %v341_v40 = vmul.f32 0.00390625, %v323_v34 }
  0xa2   : > { %v366_v48 = vperm.slane %v339_v37, %v365_v36  ;;  %v343_v49 = vmul.f32 0.00390625, %v329_v35  ;;  %v499_v35 = vshrl.u32 %v364_v32, 7 }
  0xa3   : > { %v372_v51 = vperm.slane %v341_v40, %v371_v39 }
  0xa4   : > { %v380_v57 = vperm.slane %v343_v49, %v379_v46  ;;  %739 = vset.pattern.permute.xlu2 %v499_v35  ;;  %v512_v36 = vadd.s32 16, %v499_v35  ;;  %v506_v37 = vadd.s32 8, %v499_v35 }
  0xa6   : > { %741 = vset.pattern.permute.xlu1 %v512_v36  ;;  %740 = vset.pattern.permute.xlu0 %v506_v37 }
  0xa7   : > { %v320_v41 = vpop.xlane.xlu0 %319 }
  0xa8   : > { %v340_v43 = vmul.f32 0.00390625, %v320_v41  ;;  %v326_v44 = vpop.xlane.xlu1 %325 }
  0xa9   : > { %v332_v45 = vpop.xlane.xlu2 %331  ;;  %v342_v47 = vmul.f32 0.00390625, %v326_v44 }
  0xaa   : > { %v368_v50 = vperm.slane %v340_v43, %v367_v38  ;;  %v344_v54 = vmul.f32 0.00390625, %v332_v45  ;;  %v451_v38 = vld [vmem:[%s1155_s6] sm:$0x1] }
  0xab   : > { %v376_v52 = vperm.slane %v342_v47, %v375_v42 }
  0xac   : > { %v370_v55 = vsel %vm369_vm0, %v368_v50, %v366_v48  ;;  %v384_v60 = vperm.slane %v344_v54, %v383_v53  ;;  %v530_v54 = vadd.s32 40, %v499_v35 }
  0xad   : > { %v374_v56 = vsel %vm373_vm1, %v372_v51, %v370_v55  ;;  %v518_v55 = vadd.s32 24, %v499_v35 }
  0xae   : > { %v378_v58 = vsel %vm377_vm2, %v376_v52, %v374_v56  ;;  %v542_v56 = vadd.s32 56, %v499_v35 }
  0xaf   : > { %v335_v61 = vpop.xlane.xlu0 %334  ;;  %v382_v7 = vsel %vm381_vm3, %v380_v57, %v378_v58  ;;  %v524_v57 = vadd.s32 32, %v499_v35  ;;  %v536_v58 = vadd.s32 48, %v499_v35 }
  0xb0   : > { %v345_v63 = vmul.f32 0.00390625, %v335_v61  ;;  %v338_v3 = vpop.xlane.xlu1 %337  ;;  %v386_v17 = vsel %vm385_vm4, %v384_v60, %v382_v7 }
  0xb1   : > { %v346_v8 = vmul.f32 0.00390625, %v338_v3 }
  0xb2   : > { %v388_v15 = vperm.slane %v345_v63, %v387_v59 }
  0xb3   : > { %v392_v16 = vperm.slane %v346_v8, %v391_v62 }
  0xb4   : > { %v390_v22 = vsel %vm389_vm5, %v388_v15, %v386_v17 }
  0xb5   : > { %v394_v23 = vsel %vm393_vm6, %v392_v16, %v390_v22 }
  0xb6   : > { %676 = vmatmul.msk.f32.vlgmr.msra.gmra.mxu0 %vm395_vm7, %v394_v23 }
 0x133   : > { %v415_v26 = vpop.f32.mrf.mxu0 }
 0x134   : > { %v416_v27 = vadd.f32 %v415_v26, %v355_v25 }
 0x136   : > { %v418_v28 = vmax.f32 %v416_v27, 0.0 }
 0x138   : > { %678 = vmatmul.msk.f32.vlgmr.msra.gmra.mxu1 %vm421_vm9, %v418_v28 }
 0x1b5   : > { %v446_v31 = vpop.f32.mrf.mxu1 }
 0x1b6   : > { %v447_v33 = vadd.f32 %v446_v31, %v420_v30 }
 0x1b8   : > { %v449_v34 = vmax.f32 %v447_v33, 0.0 }
 0x1ba   : > { %680 = vmatmul.msk.f32.vlgmr.msra.gmra.mxu2 %vm421_vm9, %v449_v34 }
 0x23d   : > { %v475_v39 = vpop.f32.mrf.mxu2 }
 0x23e   : > { %v476_v40 = vadd.f32 %v475_v39, %v451_v38 }
 0x240   : > { %v681_v41 = vmul.f32 -1.442695, %v476_v40 }
 0x242   : > { %748 = vpow2.f32 %v681_v41 }
 0x248   : > { %v749_v42 = vpop.eup %748 }
 0x249   : > { %v481_v43 = vadd.f32 1.0, %v749_v42 }
 0x24b   : > { %750 = vrcp.f32 %v481_v43  ;;  %v493_v32 = vand.u32 2147483648, %v481_v43  ;;  %v491_v48 = vand.u32 2147483647, %v481_v43  ;;  %vm487_vm11 = vweird.f32 %v481_v43 }
 0x24d   : > { %v494_v50 = vor.u32 1.1754944e-38, %v493_v32  ;;  %vm492_vm13 = vcmp.eq.f32.partialorder %v491_v48, 8.507059e+37 }
 0x251   : > { %v751_v44 = vpop.eup %750 }
 0x252   : > { %v483_v45 = vmul.f32 %v751_v44, %v481_v43  ;;  %vm488_vm10 = vweird.f32 %v751_v44 }
 0x253   : > { %vm489_vm12 = vmor %vm487_vm11, %vm488_vm10 }
 0x254   : > { %v484_v46 = vsub.f32 1.0, %v483_v45 }
 0x256   : > { %v485_v47 = vmul.f32 %v751_v44, %v484_v46 }
 0x258   : > { %v486_v49 = vadd.f32 %v751_v44, %v485_v47 }
 0x25a   : > { %v490_v51 = vsel %vm489_vm12, %v751_v44, %v486_v49 }
 0x25b   : > { %v495_v52 = vsel %vm492_vm13, %v494_v50, %v490_v51 }
 0x25c   : > { %v497_v53 = vperm.slane %v495_v52, 0 }
 0x25e   : > { %514 = vperm.xlu1 %741, %v497_v53   ;;  %508 = vperm.xlu0 %740, %v497_v53  }
 0x25f   : > { %502 = vperm.xlu2 %739, %v497_v53  }
 0x266   : > { %744 = vset.pattern.permute.xlu1 %v530_v54  ;;  %747 = vset.pattern.permute.xlu0 %v542_v56 }
 0x267   : > { %742 = vset.pattern.permute.xlu2 %v518_v55 }
 0x26e   : > { %532 = vperm.xlu1 %744, %v497_v53  }
 0x26f   : > { %520 = vperm.xlu2 %742, %v497_v53  }
 0x276   : > { %746 = vset.pattern.permute.xlu1 %v542_v56 }
 0x277   : > { %743 = vset.pattern.permute.xlu2 %v524_v57 }
 0x27e   : > { %544 = vperm.xlu1 %746, %v497_v53  }
 0x27f   : > { %526 = vperm.xlu2 %743, %v497_v53  }
 0x287   : > { %745 = vset.pattern.permute.xlu2 %v536_v58 }
 0x28f   : > { %538 = vperm.xlu2 %745, %v497_v53  }
 0x2b9   : > { %v503_v59 = vpop.permute.xlu2 %502 }
 0x2ba   : > { %v546_v60 = vmul.f32 %v503_v59, %v990_v0  ;;  %v547_v61 = vmul.f32 %v503_v59, %v992_v1 }
 0x2bc   : > { %562 = vst [vmem:[%s1083_s12] sm:$0xff] %v546_v60 }
 0x2bd   : > { %563 = vst [vmem:[%s1083_s12 + $0x8] sm:$0xff] %v547_v61 }
 0x2c9   : > { %v521_v62 = vpop.permute.xlu2 %520 }
 0x2ca   : > { %v552_v63 = vmul.f32 %v521_v62, %v1012_v11  ;;  %v553_v0 = vmul.f32 %v521_v62, %v1014_v12 }
 0x2cc   : > { %568 = vst [vmem:[%s1083_s12 + $0x30] sm:$0xff] %v552_v63 }
 0x2cd   : > { %569 = vst [vmem:[%s1083_s12 + $0x38] sm:$0xff] %v553_v0 }
 0x2d0   : > { %v515_v1 = vpop.permute.xlu1 %514  ;;  %v509_v3 = vpop.permute.xlu0 %508 }
 0x2d1   : > { %v550_v7 = vmul.f32 %v515_v1, %v994_v2  ;;  %v551_v8 = vmul.f32 %v515_v1, %v998_v4  ;;  %v548_v15 = vmul.f32 %v509_v3, %v1008_v9  ;;  %v549_v16 = vmul.f32 %v509_v3, %v1010_v10 }
 0x2d3   : > { %566 = vst [vmem:[%s1083_s12 + $0x20] sm:$0xff] %v550_v7 }
 0x2d4   : > { %567 = vst [vmem:[%s1083_s12 + $0x28] sm:$0xff] %v551_v8 }
 0x2d5   : > { %564 = vst [vmem:[%s1083_s12 + $0x10] sm:$0xff] %v548_v15 }
 0x2d6   : > { %565 = vst [vmem:[%s1083_s12 + $0x18] sm:$0xff] %v549_v16 }
 0x2d9   : > { %v527_v11 = vpop.permute.xlu2 %526 }
 0x2da   : > { %v554_v12 = vmul.f32 %v527_v11, %v1000_v5  ;;  %v555_v2 = vmul.f32 %v527_v11, %v1002_v6 }
 0x2dc   : > { %570 = vst [vmem:[%s1083_s12 + $0x40] sm:$0xff] %v554_v12 }
 0x2dd   : > { %571 = vst [vmem:[%s1083_s12 + $0x48] sm:$0xff] %v555_v2 }
 0x2e0   : > { %v533_v4 = vpop.permute.xlu1 %532 }
 0x2e1   : > { %v556_v9 = vmul.f32 %v533_v4, %v1016_v13  ;;  %v557_v17 = vmul.f32 %v533_v4, %v1018_v14 }
 0x2e3   : > { %572 = vst [vmem:[%s1083_s12 + $0x50] sm:$0xff] %v556_v9 }
 0x2e4   : > { %573 = vst [vmem:[%s1083_s12 + $0x58] sm:$0xff] %v557_v17 }
 0x2e9   : > { %v539_v10 = vpop.permute.xlu2 %538 }
 0x2ea   : > { %v558_v22 = vmul.f32 %v539_v10, %v1026_v18  ;;  %v559_v5 = vmul.f32 %v539_v10, %v1028_v19 }
 0x2ec   : > { %574 = vst [vmem:[%s1083_s12 + $0x60] sm:$0xff] %v558_v22 }
 0x2ed   : > { %575 = vst [vmem:[%s1083_s12 + $0x68] sm:$0xff] %v559_v5 }
 0x2f0   : > { %v545_v6 = vpop.permute.xlu1 %544 }
 0x2f1   : > { %v560_v13 = vmul.f32 %v545_v6, %v1030_v20  ;;  %v561_v14 = vmul.f32 %v545_v6, %v1032_v21 }
 0x2f3   : > { %576 = vst [vmem:[%s1083_s12 + $0x70] sm:$0xff] %v560_v13 }
 0x2f4   : > { %577 = vst [vmem:[%s1083_s12 + $0x78] sm:$0xff] %v561_v14 }
 0x2f5   : > { %809 = shalt.err (!%p806_p4)
}
 0x2f6   : > { %s852_s22 = smov 256   ;;  %s853_s12 = smov 16  }
 0x2f7   : > { %691 = dma.vmem_to_hbm [thread:$0]  (%p944_p11), %s592_s8, 2048, %s594_s17, %s579_s28, %s852_s22, %s852_s22, %s853_s12  }
 0x2f8 PF: > { %s608_s10 = sand.u32 1, %s836_s24   ;;  %p1163_p7 = scmp.ge.s32.totalorder %s848_s27, 2 }
 0x2f9   : > { %s609_s21 = scalar_lea.sflag [#allocation4], %s608_s10 }
 0x2fa   : > { %p698_p5 = pnand %p1163_p7, %p948_p12 }
 0x2fc   : > { %p699_p8 = pneg %p698_p5 }
 0x2fe   : > { %831 = dma.done.wait (%p699_p8), %s609_s21, 2048  }
 0x2ff   : > { %833 = vsyncadd (%p699_p8), %s609_s21, 4294965248  ;;  %s1164_s23 = sld [smem:[#allocation8_spill]]  ;;  %p20_p10 = scmp.ge.s32.totalorder %s919_s30, 4  }
 0x300   : > { %s1165_s24 = smov %s840_s25  ;;  %s1166_s25 = smov %s844_s26 }
 0x301   : > { %s1168_s27 = smov %s919_s30  ;;  %22 = sbr.rel (!%p20_p10) target bundleno = 5 (0x5), region = 93 }
 0x305   : > { %s1167_s26 = smov %s1164_s23 }
 0x306   :  { %615 = vsyncpa [#allocation3], 1 }
 0x307   :  { %617 = vsyncpa [#allocation3 + $0x1], 1 }
 0x308   :  { %618 = vsyncpa [#allocation4], 1 }
 0x309   :  { %620 = vsyncpa [#allocation4 + $0x1], 1 }

</bundles_post_ra>
